<compile_context>
chip_gen: v7x
topology: tpu7x:2x2x1
jax: 0.10.0
libtpu: 0.0.40
codegen_flags: <defaults>
</compile_context>

<pallas_src>
import functools

import jax
import jax.numpy as jnp
from jax.experimental import pallas as pl
from jax.experimental.pallas import tpu as pltpu

VOCAB = 10
EMBED_DIM = 20
DROP_P = 0.2
_KEEP_THRESH = int(round((1.0 - DROP_P) * (1 << 32)))   # keep iff bits < thresh
_INV_KEEP = 1.0 / (1.0 - DROP_P)

_MAX_BLOCK_LANES = 8192   # per-block lane width; f32 out block ~= 768 KiB
_SMALL_B_BYPASS = 1024    # below this, XLA's fused gather beats kernel launch


def _gather_block(idx_ref, tab_t_ref):
    """(D, B_blk) block with out[d, b] = table[idx[b], d].

    Binary-tree select on the 4 bits of idx: 9 selects over (D, B) plus 4
    lane-dense bit masks, instead of 10 compare+select pairs.  Bit-exact for
    idx in [0, VOCAB).
    """
    idx = idx_ref[...]                      # (1, B_blk) int32, lane-dense
    tab = tab_t_ref[...]                    # (D, V) float32, VMEM-resident
    col = lambda v: tab[:, v:v + 1]         # (D, 1) static lane slice

    b0 = (idx & 1) != 0                     # (1, B) masks, broadcast over D
    b1 = (idx & 2) != 0
    b2 = (idx & 4) != 0
    b3 = (idx & 8) != 0

    s01 = jnp.where(b0, col(1), col(0))     # bit 0: 5 pairwise selects
    s23 = jnp.where(b0, col(3), col(2))
    s45 = jnp.where(b0, col(5), col(4))
    s67 = jnp.where(b0, col(7), col(6))
    s89 = jnp.where(b0, col(9), col(8))
    s0123 = jnp.where(b1, s23, s01)         # bit 1: 2 selects
    s4567 = jnp.where(b1, s67, s45)
    s07 = jnp.where(b2, s4567, s0123)       # bit 2: 1 select
    return jnp.where(b3, s89, s07)          # bit 3: 1 select


def _embed_eval_kernel(idx_ref, tab_t_ref, out_ref):
    """Eval-mode forward: exact embedding gather (dropout = identity)."""
    out_ref[...] = _gather_block(idx_ref, tab_t_ref).astype(out_ref.dtype)


def _embed_train_kernel(seed_ref, idx_ref, tab_t_ref, out_ref):
    """Training-mode forward: gather + inverted dropout in a single select."""
    emb = _gather_block(idx_ref, tab_t_ref)
    pltpu.prng_seed(seed_ref[0] + pl.program_id(0))      # distinct mask / block
    bits = pltpu.bitcast(pltpu.prng_random_bits(emb.shape), jnp.uint32)
    out_ref[...] = jnp.where(bits < jnp.uint32(_KEEP_THRESH),
                             emb * _INV_KEEP, 0.0).astype(out_ref.dtype)


def _round_up(x, m):
    return (x + m - 1) // m * m


def _block_plan(b):
    """(b_blk, n_blk, b_pad): pad to 128 lanes; >=2 even grid steps for v7x."""
    b_pad = _round_up(b, 128)
    n_blk = pl.cdiv(b_pad, _MAX_BLOCK_LANES)
    if b_pad >= 256:
        n_blk = _round_up(max(n_blk, 2), 2)   # megacore: even, >= 2 steps
    b_blk = _round_up(pl.cdiv(b_pad, n_blk), 128)
    return b_blk, n_blk, n_blk * b_blk


@functools.partial(jax.jit,
                   static_argnames=("training", "lane_major", "use_pallas"))
def span_length_embedding(length, table, *, training=False, seed=0,
                          lane_major=False, use_pallas=None):
    """Pallas implementation of Span_Length_Embedding.forward.

    length     : scalar or (B,) int array with values in [0, 10)
    table      : (10, 20) float32 embedding weights
    lane_major : if True, return (EMBED_DIM, B) (no wrapper-side transpose);
                 default False returns the torch-compatible (B, EMBED_DIM).
    use_pallas : None = auto (bypass kernel for small B), True/False = force.
    """
    length = jnp.atleast_1d(length).astype(jnp.int32)
    B = length.shape[0]
    table = table.astype(jnp.float32)

    if use_pallas is None:
        use_pallas = B >= _SMALL_B_BYPASS

    if not use_pallas:
        # Small-batch bypass: launch + padding overhead dominates the kernel.
        out = jnp.take(table, length, axis=0)                     # (B, D)
        if training:
            keep = jax.random.bernoulli(jax.random.PRNGKey(seed),
                                        1.0 - DROP_P, out.shape)
            out = jnp.where(keep, out * _INV_KEEP, 0.0)
        return out.T if lane_major else out

    b_blk, n_blk, b_pad = _block_plan(B)

    # Lane-dense (1, b_pad) index row; pad with 0 (valid id, rows sliced off).
    idx_row = jnp.zeros((1, b_pad), jnp.int32).at[0, :B].set(length)
    tab_t = table.T                                               # (D, V)

    out_shape = jax.ShapeDtypeStruct((EMBED_DIM, b_pad), jnp.float32)
    params = pltpu.CompilerParams(dimension_semantics=("parallel",))

    if not training:
        out_t = pl.pallas_call(
            _embed_eval_kernel,
            out_shape=out_shape,
            grid=(n_blk,),
            in_specs=[
                pl.BlockSpec((1, b_blk), lambda i: (0, i)),          # indices
                pl.BlockSpec((EMBED_DIM, VOCAB), lambda i: (0, 0)),  # table
            ],
            out_specs=pl.BlockSpec((EMBED_DIM, b_blk), lambda i: (0, i)),
            compiler_params=params,
        )(idx_row, tab_t)
    else:
        seed_arr = jnp.asarray([seed], dtype=jnp.int32)
        out_t = pl.pallas_call(
            _embed_train_kernel,
            out_shape=out_shape,
            grid_spec=pltpu.PrefetchScalarGridSpec(
                num_scalar_prefetch=1,                               # seed->SMEM
                grid=(n_blk,),
                in_specs=[
                    pl.BlockSpec((1, b_blk), lambda i, s: (0, i)),
                    pl.BlockSpec((EMBED_DIM, VOCAB), lambda i, s: (0, 0)),
                ],
                out_specs=pl.BlockSpec((EMBED_DIM, b_blk), lambda i, s: (0, i)),
            ),
            compiler_params=params,
        )(seed_arr, idx_row, tab_t)

    out_t = out_t[:, :B]                       # (EMBED_DIM, B), lane-dense
    # lane_major=True avoids the extra full-output XLA transpose pass; the
    # default keeps the torch (B, EMBED_DIM) convention at that cost.
    return out_t if lane_major else out_t.T


if __name__ == "__main__":
    key = jax.random.PRNGKey(0)
    k_tab, k_len = jax.random.split(key)

    # Deterministic parameter init: nn.Embedding default is N(0, 1).
    table = jax.random.normal(k_tab, (VOCAB, EMBED_DIM), dtype=jnp.float32)

    # Batch of 8 span lengths mapped to indices in [0, 10).
    batch = 8
    lengths = jax.random.randint(k_len, (batch,), 0, VOCAB, dtype=jnp.int32)

    # Force the Pallas path so the kernel is exercised even at this tiny B.
    out = span_length_embedding(lengths, table, training=False, use_pallas=True)
    out = jax.block_until_ready(out)

    ref = jnp.take(table, lengths, axis=0)
    assert out.shape == (batch, EMBED_DIM)
    assert jnp.array_equal(out, ref), "mismatch vs reference gather"

    # Lane-major (EMBED_DIM, B) output: same data, no wrapper transpose.
    out_lm = jax.block_until_ready(
        span_length_embedding(lengths, table, use_pallas=True, lane_major=True))
    assert out_lm.shape == (EMBED_DIM, batch)
    assert jnp.array_equal(out_lm, ref.T), "lane-major mismatch"

    # Auto path (small-B bypass) must agree bit-exactly as well.
    out_auto = jax.block_until_ready(span_length_embedding(lengths, table))
    assert jnp.array_equal(out_auto, ref), "bypass mismatch"

    print("KERNEL_OK")
</pallas_src>

<mosaic_0001>
module attributes {stable_mosaic.version = 11 : i64} {
  func.func @_embed_eval_kernel(%arg0: i32, %arg1: memref<1x128xi32, #tpu.memory_space<vmem>>, %arg2: memref<20x10xf32, #tpu.memory_space<vmem>>, %arg3: memref<20x128xf32, #tpu.memory_space<vmem>>) attributes {dimension_semantics = [#tpu.dimension_semantics<parallel>], iteration_bounds = array<i64: 1>, scalar_prefetch = 0 : i64, scratch_operands = 0 : i64, tpu.core_type = #tpu.core_type<tc>, window_params = [{transform_indices = @transform_0, window_bounds = array<i64: 1, 128>}, {pipeline_mode = #tpu.pipeline_mode<synchronous>, transform_indices = @transform_1, window_bounds = array<i64: 20, 10>}, {transform_indices = @transform_2, window_bounds = array<i64: 20, 128>}]} {
    %c0 = arith.constant 0 : index
    %c0_0 = arith.constant 0 : index
    %0 = vector.load %arg1[%c0, %c0_0] : memref<1x128xi32, #tpu.memory_space<vmem>>, vector<1x128xi32>
    %c0_1 = arith.constant 0 : index
    %c0_2 = arith.constant 0 : index
    %1 = vector.load %arg2[%c0_1, %c0_2] : memref<20x10xf32, #tpu.memory_space<vmem>>, vector<20x10xf32>
    %c1_i32 = arith.constant 1 : i32
    %2 = vector.broadcast %c1_i32 : i32 to vector<1x128xi32>
    %3 = arith.andi %0, %2 : vector<1x128xi32>
    %c0_i32 = arith.constant 0 : i32
    %4 = vector.broadcast %c0_i32 : i32 to vector<1x128xi32>
    %5 = arith.cmpi ne, %3, %4 : vector<1x128xi32>
    %c2_i32 = arith.constant 2 : i32
    %6 = vector.broadcast %c2_i32 : i32 to vector<1x128xi32>
    %7 = arith.andi %0, %6 : vector<1x128xi32>
    %c0_i32_3 = arith.constant 0 : i32
    %8 = vector.broadcast %c0_i32_3 : i32 to vector<1x128xi32>
    %9 = arith.cmpi ne, %7, %8 : vector<1x128xi32>
    %c4_i32 = arith.constant 4 : i32
    %10 = vector.broadcast %c4_i32 : i32 to vector<1x128xi32>
    %11 = arith.andi %0, %10 : vector<1x128xi32>
    %c0_i32_4 = arith.constant 0 : i32
    %12 = vector.broadcast %c0_i32_4 : i32 to vector<1x128xi32>
    %13 = arith.cmpi ne, %11, %12 : vector<1x128xi32>
    %c8_i32 = arith.constant 8 : i32
    %14 = vector.broadcast %c8_i32 : i32 to vector<1x128xi32>
    %15 = arith.andi %0, %14 : vector<1x128xi32>
    %c0_i32_5 = arith.constant 0 : i32
    %16 = vector.broadcast %c0_i32_5 : i32 to vector<1x128xi32>
    %17 = arith.cmpi ne, %15, %16 : vector<1x128xi32>
    %18 = vector.extract_strided_slice %1 {offsets = [0, 1], sizes = [20, 1], strides = [1, 1]} : vector<20x10xf32> to vector<20x1xf32>
    %19 = vector.extract_strided_slice %1 {offsets = [0, 0], sizes = [20, 1], strides = [1, 1]} : vector<20x10xf32> to vector<20x1xf32>
    %20 = vector.shape_cast %5 : vector<1x128xi1> to vector<1x128xi1>
    %21 = vector.broadcast %20 : vector<1x128xi1> to vector<20x128xi1>
    %22 = vector.shape_cast %18 : vector<20x1xf32> to vector<20x1xf32>
    %23 = vector.broadcast %22 : vector<20x1xf32> to vector<20x128xf32>
    %24 = vector.shape_cast %19 : vector<20x1xf32> to vector<20x1xf32>
    %25 = vector.broadcast %24 : vector<20x1xf32> to vector<20x128xf32>
    %26 = arith.select %21, %23, %25 : vector<20x128xi1>, vector<20x128xf32>
    %27 = vector.extract_strided_slice %1 {offsets = [0, 3], sizes = [20, 1], strides = [1, 1]} : vector<20x10xf32> to vector<20x1xf32>
    %28 = vector.extract_strided_slice %1 {offsets = [0, 2], sizes = [20, 1], strides = [1, 1]} : vector<20x10xf32> to vector<20x1xf32>
    %29 = vector.shape_cast %5 : vector<1x128xi1> to vector<1x128xi1>
    %30 = vector.broadcast %29 : vector<1x128xi1> to vector<20x128xi1>
    %31 = vector.shape_cast %27 : vector<20x1xf32> to vector<20x1xf32>
    %32 = vector.broadcast %31 : vector<20x1xf32> to vector<20x128xf32>
    %33 = vector.shape_cast %28 : vector<20x1xf32> to vector<20x1xf32>
    %34 = vector.broadcast %33 : vector<20x1xf32> to vector<20x128xf32>
    %35 = arith.select %30, %32, %34 : vector<20x128xi1>, vector<20x128xf32>
    %36 = vector.extract_strided_slice %1 {offsets = [0, 5], sizes = [20, 1], strides = [1, 1]} : vector<20x10xf32> to vector<20x1xf32>
    %37 = vector.extract_strided_slice %1 {offsets = [0, 4], sizes = [20, 1], strides = [1, 1]} : vector<20x10xf32> to vector<20x1xf32>
    %38 = vector.shape_cast %5 : vector<1x128xi1> to vector<1x128xi1>
    %39 = vector.broadcast %38 : vector<1x128xi1> to vector<20x128xi1>
    %40 = vector.shape_cast %36 : vector<20x1xf32> to vector<20x1xf32>
    %41 = vector.broadcast %40 : vector<20x1xf32> to vector<20x128xf32>
    %42 = vector.shape_cast %37 : vector<20x1xf32> to vector<20x1xf32>
    %43 = vector.broadcast %42 : vector<20x1xf32> to vector<20x128xf32>
    %44 = arith.select %39, %41, %43 : vector<20x128xi1>, vector<20x128xf32>
    %45 = vector.extract_strided_slice %1 {offsets = [0, 7], sizes = [20, 1], strides = [1, 1]} : vector<20x10xf32> to vector<20x1xf32>
    %46 = vector.extract_strided_slice %1 {offsets = [0, 6], sizes = [20, 1], strides = [1, 1]} : vector<20x10xf32> to vector<20x1xf32>
    %47 = vector.shape_cast %5 : vector<1x128xi1> to vector<1x128xi1>
    %48 = vector.broadcast %47 : vector<1x128xi1> to vector<20x128xi1>
    %49 = vector.shape_cast %45 : vector<20x1xf32> to vector<20x1xf32>
    %50 = vector.broadcast %49 : vector<20x1xf32> to vector<20x128xf32>
    %51 = vector.shape_cast %46 : vector<20x1xf32> to vector<20x1xf32>
    %52 = vector.broadcast %51 : vector<20x1xf32> to vector<20x128xf32>
    %53 = arith.select %48, %50, %52 : vector<20x128xi1>, vector<20x128xf32>
    %54 = vector.extract_strided_slice %1 {offsets = [0, 9], sizes = [20, 1], strides = [1, 1]} : vector<20x10xf32> to vector<20x1xf32>
    %55 = vector.extract_strided_slice %1 {offsets = [0, 8], sizes = [20, 1], strides = [1, 1]} : vector<20x10xf32> to vector<20x1xf32>
    %56 = vector.shape_cast %5 : vector<1x128xi1> to vector<1x128xi1>
    %57 = vector.broadcast %56 : vector<1x128xi1> to vector<20x128xi1>
    %58 = vector.shape_cast %54 : vector<20x1xf32> to vector<20x1xf32>
    %59 = vector.broadcast %58 : vector<20x1xf32> to vector<20x128xf32>
    %60 = vector.shape_cast %55 : vector<20x1xf32> to vector<20x1xf32>
    %61 = vector.broadcast %60 : vector<20x1xf32> to vector<20x128xf32>
    %62 = arith.select %57, %59, %61 : vector<20x128xi1>, vector<20x128xf32>
    %63 = vector.shape_cast %9 : vector<1x128xi1> to vector<1x128xi1>
    %64 = vector.broadcast %63 : vector<1x128xi1> to vector<20x128xi1>
    %65 = arith.select %64, %35, %26 : vector<20x128xi1>, vector<20x128xf32>
    %66 = vector.shape_cast %9 : vector<1x128xi1> to vector<1x128xi1>
    %67 = vector.broadcast %66 : vector<1x128xi1> to vector<20x128xi1>
    %68 = arith.select %67, %53, %44 : vector<20x128xi1>, vector<20x128xf32>
    %69 = vector.shape_cast %13 : vector<1x128xi1> to vector<1x128xi1>
    %70 = vector.broadcast %69 : vector<1x128xi1> to vector<20x128xi1>
    %71 = arith.select %70, %68, %65 : vector<20x128xi1>, vector<20x128xf32>
    %72 = vector.shape_cast %17 : vector<1x128xi1> to vector<1x128xi1>
    %73 = vector.broadcast %72 : vector<1x128xi1> to vector<20x128xi1>
    %74 = arith.select %73, %62, %71 : vector<20x128xi1>, vector<20x128xf32>
    %c0_6 = arith.constant 0 : index
    %c0_7 = arith.constant 0 : index
    %75 = vector.load %arg3[%c0_6, %c0_7] : memref<20x128xf32, #tpu.memory_space<vmem>>, vector<20x128xf32>
    tpu.vector_store %arg3[%c0_6, %c0_7], %74 {strides = array<i32>} : memref<20x128xf32, #tpu.memory_space<vmem>>, vector<20x128xf32>,
    return
  }
  func.func @transform_0(%arg0: i32) -> (i32, i32) {
    %c0_i32 = arith.constant 0 : i32
    %c0_i32_0 = arith.constant 0 : i32
    return %c0_i32, %arg0 : i32, i32
  }
  func.func @transform_1(%arg0: i32) -> (i32, i32) {
    %c0_i32 = arith.constant 0 : i32
    %c0_i32_0 = arith.constant 0 : i32
    %c0_i32_1 = arith.constant 0 : i32
    return %c0_i32, %c0_i32_0 : i32, i32
  }
  func.func @transform_2(%arg0: i32) -> (i32, i32) {
    %c0_i32 = arith.constant 0 : i32
    %c0_i32_0 = arith.constant 0 : i32
    return %c0_i32, %arg0 : i32, i32
  }
}

</mosaic_0001>

<bundles_post_ra>
// kernel: span_length_embedding.1
= control target key start
LH: loop header
LB: loop body
LE: loop exit
PB: predicated region body
PF: predicated region fallthrough
CT: control target
= control target key end

     0   :  { %v234_v0 = vmov 1   ;;  %v235_v4 = vmov 0   ;;  %v236_v5 = vmov 3   ;;  %v237_v6 = vmov 2   ;;  %s356_s1 = inlined_call_operand.vmem [shape: f32[20,10], index: 1, kind: input, shape index: {}]   ;;  %s357_s0 = inlined_call_operand.vmem [shape: s32[1,128], index: 0, kind: input, shape index: {}]   ;;  %s358_s2 = inlined_call_operand.vmem [shape: f32[20,128], index: 2, kind: output, shape index: {}]  }
   0x1   :  { %215 = vset.pattern.permute.xlu1 %v234_v0  ;;  %214 = vset.pattern.permute.xlu0 %v234_v0  ;;  %v14_v1 = vld [vmem:[%s356_s1 + $0x10] sm:$0xf]  ;;  %v12_v2 = vld [vmem:[%s356_s1] sm:$0xff]  ;;  %v13_v3 = vld [vmem:[%s356_s1 + $0x8] sm:$0xff]  ;;  %v238_v7 = vmov 5   ;;  %v239_v8 = vmov 4   ;;  %v24_v14 = vlaneseq }
   0x2   :  { %41 = vperm.xlu1 %215, %v14_v1   ;;  %31 = vperm.xlu0 %214, %v12_v2   ;;  %v240_v9 = vmov 7   ;;  %v241_v10 = vmov 6   ;;  %v242_v11 = vmov 9   ;;  %v243_v12 = vmov 8   ;;  %v11_v13 = vld [vmem:[%s357_s0] sm:$0x1] }
   0x3   :  { %v15_v15 = vand.u32 1, %v11_v13  ;;  %v25_v16 = vshrl.u32 %v24_v14, 7  ;;  %v17_v26 = vand.u32 2, %v11_v13  ;;  %v19_v46 = vand.u32 4, %v11_v13 }
   0x4   :  { %v21_v48 = vand.u32 8, %v11_v13 }
   0x5   :  { %vm16_vm0 = vcmp.ne.s32.totalorder %v15_v15, 0  ;;  %v26_v17 = vsub.s32 0, %v25_v16  ;;  %vm18_vm2 = vcmp.ne.s32.totalorder %v17_v26, 0  ;;  %vm20_vm4 = vcmp.ne.s32.totalorder %v19_v46, 0 }
   0x6   :  { %216 = vset.pattern.permute.xlu1 %v235_v4  ;;  %36 = vperm.xlu0 %214, %v13_v3   ;;  %v23_v18 = vsel %vm16_vm0, 1, %v235_v4  ;;  %v167_v32 = vsel %vm18_vm2, 1, %v235_v4  ;;  %vm22_vm5 = vcmp.ne.s32.totalorder %v21_v48, 0  ;;  %v179_v51 = vsel %vm20_vm4, 1, %v235_v4 }
   0x7   :  { %45 = vperm.xlu1 %216, %v12_v2   ;;  %v27_v19 = vrot.slane %v23_v18, %v26_v17  ;;  %v171_v34 = vrot.slane %v167_v32, %v26_v17  ;;  %v188_v53 = vsel %vm22_vm5, 1, %v235_v4  ;;  %v183_v54 = vrot.slane %v179_v51, %v26_v17 }
   0x8   :  { %v192_v58 = vrot.slane %v188_v53, %v26_v17 }
   0x9   :  { %vm274_vm1 = vcmp.eq.s32.totalorder %v27_v19, 1  ;;  %vm283_vm3 = vcmp.eq.s32.totalorder %v171_v34, 1  ;;  %vm307_vm6 = vcmp.eq.s32.totalorder %v183_v54, 1 }
   0xa   :  { %217 = vset.pattern.permute.xlu0 %v235_v4  ;;  %vm311_vm7 = vcmp.eq.s32.totalorder %v192_v58, 1 }
   0xb   :  { %53 = vperm.xlu1 %216, %v14_v1   ;;  %49 = vperm.xlu0 %217, %v13_v3  }
   0xf   :  { %218 = vset.pattern.permute.xlu1 %v236_v5  ;;  %219 = vset.pattern.permute.xlu0 %v236_v5 }
  0x10   :  { %60 = vperm.xlu1 %218, %v12_v2   ;;  %64 = vperm.xlu0 %219, %v13_v3  }
  0x14   :  { %68 = vperm.xlu1 %218, %v14_v1   ;;  %221 = vset.pattern.permute.xlu0 %v237_v6 }
  0x15   :  { %76 = vperm.xlu0 %221, %v13_v3  }
  0x18   :  { %220 = vset.pattern.permute.xlu1 %v237_v6 }
  0x19   :  { %72 = vperm.xlu1 %220, %v12_v2   ;;  %223 = vset.pattern.permute.xlu0 %v238_v7 }
  0x1a   :  { %91 = vperm.xlu0 %223, %v13_v3  }
  0x1d   :  { %80 = vperm.xlu1 %220, %v14_v1  }
  0x1e   :  { %225 = vset.pattern.permute.xlu0 %v239_v8 }
  0x1f   :  { %103 = vperm.xlu0 %225, %v13_v3  }
  0x21   :  { %222 = vset.pattern.permute.xlu1 %v238_v7 }
  0x22   :  { %87 = vperm.xlu1 %222, %v12_v2  }
  0x23   :  { %227 = vset.pattern.permute.xlu0 %v240_v9 }
  0x24   :  { %118 = vperm.xlu0 %227, %v13_v3  }
  0x26   :  { %95 = vperm.xlu1 %222, %v14_v1  }
  0x28   :  { %229 = vset.pattern.permute.xlu0 %v241_v10 }
  0x29   :  { %130 = vperm.xlu0 %229, %v13_v3  }
  0x2a   :  { %224 = vset.pattern.permute.xlu1 %v239_v8 }
  0x2b   :  { %99 = vperm.xlu1 %224, %v12_v2  }
  0x2d   :  { %231 = vset.pattern.permute.xlu0 %v242_v11 }
  0x2e   :  { %145 = vperm.xlu0 %231, %v13_v3  }
  0x2f   :  { %107 = vperm.xlu1 %224, %v14_v1  }
  0x32   :  { %233 = vset.pattern.permute.xlu0 %v243_v12 }
  0x33   :  { %226 = vset.pattern.permute.xlu1 %v240_v9  ;;  %157 = vperm.xlu0 %233, %v13_v3  }
  0x34   :  { %114 = vperm.xlu1 %226, %v12_v2  }
  0x38   :  { %122 = vperm.xlu1 %226, %v14_v1  }
  0x3c   :  { %228 = vset.pattern.permute.xlu1 %v241_v10 }
  0x3d   :  { %126 = vperm.xlu1 %228, %v12_v2  }
  0x41   :  { %134 = vperm.xlu1 %228, %v14_v1  }
  0x45   :  { %230 = vset.pattern.permute.xlu1 %v242_v11 }
  0x46   :  { %141 = vperm.xlu1 %230, %v12_v2  }
  0x4a   :  { %149 = vperm.xlu1 %230, %v14_v1  }
  0x4e   :  { %232 = vset.pattern.permute.xlu1 %v243_v12 }
  0x4f   :  { %153 = vperm.xlu1 %232, %v12_v2  }
  0x53   :  { %161 = vperm.xlu1 %232, %v14_v1  }
  0x81   :  { %v42_v20 = vpop.permute.xlu1 %41  ;;  %v32_v21 = vpop.permute.xlu0 %31 }
  0x85   :  { %v37_v23 = vpop.permute.xlu0 %36 }
  0x86   :  { %v46_v24 = vpop.permute.xlu1 %45 }
  0x87   :  { %v56_v25 = vsel %vm274_vm1, %v32_v21, %v46_v24 }
  0x8a   :  { %v54_v27 = vpop.permute.xlu1 %53  ;;  %v50_v28 = vpop.permute.xlu0 %49 }
  0x8b   :  { %v58_v29 = vsel %vm274_vm1, %v42_v20, %v54_v27  ;;  %v57_v60 = vsel %vm274_vm1, %v37_v23, %v50_v28 }
  0x8f   :  { %v61_v30 = vpop.permute.xlu1 %60  ;;  %v65_v31 = vpop.permute.xlu0 %64 }
  0x93   :  { %v69_v33 = vpop.permute.xlu1 %68 }
  0x94   :  { %v77_v35 = vpop.permute.xlu0 %76 }
  0x95   :  { %v84_v61 = vsel %vm274_vm1, %v65_v31, %v77_v35 }
  0x96   :  { %v174_v1 = vsel %vm283_vm3, %v84_v61, %v57_v60 }
  0x98   :  { %v73_v37 = vpop.permute.xlu1 %72 }
  0x99   :  { %v83_v38 = vsel %vm274_vm1, %v61_v30, %v73_v37  ;;  %v92_v39 = vpop.permute.xlu0 %91 }
  0x9a   :  { %v173_v40 = vsel %vm283_vm3, %v83_v38, %v56_v25 }
  0x9c   :  { %v81_v41 = vpop.permute.xlu1 %80 }
  0x9d   :  { %v85_v42 = vsel %vm274_vm1, %v69_v33, %v81_v41 }
  0x9e   :  { %v175_v43 = vsel %vm283_vm3, %v85_v42, %v58_v29  ;;  %v104_v44 = vpop.permute.xlu0 %103 }
  0x9f   :  { %v111_v55 = vsel %vm274_vm1, %v92_v39, %v104_v44 }
  0xa1   :  { %v88_v45 = vpop.permute.xlu1 %87 }
  0xa3   :  { %v119_v47 = vpop.permute.xlu0 %118 }
  0xa5   :  { %v96_v49 = vpop.permute.xlu1 %95 }
  0xa8   :  { %v131_v50 = vpop.permute.xlu0 %130 }
  0xa9   :  { %v138_v56 = vsel %vm274_vm1, %v119_v47, %v131_v50 }
  0xaa   :  { %v100_v52 = vpop.permute.xlu1 %99  ;;  %v177_v62 = vsel %vm283_vm3, %v138_v56, %v111_v55 }
  0xab   :  { %v186_v4 = vsel %vm307_vm6, %v177_v62, %v174_v1  ;;  %v110_v9 = vsel %vm274_vm1, %v88_v45, %v100_v52 }
  0xad   :  { %v146_v57 = vpop.permute.xlu0 %145 }
  0xae   :  { %v108_v59 = vpop.permute.xlu1 %107 }
  0xaf   :  { %v112_v14 = vsel %vm274_vm1, %v96_v49, %v108_v59 }
  0xb2   :  { %v158_v2 = vpop.permute.xlu0 %157 }
  0xb3   :  { %v165_v3 = vsel %vm274_vm1, %v146_v57, %v158_v2  ;;  %v115_v5 = vpop.permute.xlu1 %114 }
  0xb4   :  { %v195_v6 = vsel %vm311_vm7, %v165_v3, %v186_v4 }
  0xb5   :  { %198 = vst [vmem:[%s358_s2 + $0x8] sm:$0xff] %v195_v6 }
  0xb7   :  { %v123_v7 = vpop.permute.xlu1 %122 }
  0xbc   :  { %v127_v8 = vpop.permute.xlu1 %126 }
  0xbd   :  { %v137_v10 = vsel %vm274_vm1, %v115_v5, %v127_v8 }
  0xbe   :  { %v176_v11 = vsel %vm283_vm3, %v137_v10, %v110_v9 }
  0xbf   :  { %v185_v12 = vsel %vm307_vm6, %v176_v11, %v173_v40 }
  0xc0   :  { %v135_v13 = vpop.permute.xlu1 %134 }
  0xc1   :  { %v139_v15 = vsel %vm274_vm1, %v123_v7, %v135_v13 }
  0xc2   :  { %v178_v16 = vsel %vm283_vm3, %v139_v15, %v112_v14 }
  0xc3   :  { %v187_v17 = vsel %vm307_vm6, %v178_v16, %v175_v43 }
  0xc5   :  { %v142_v18 = vpop.permute.xlu1 %141 }
  0xc9   :  { %v150_v19 = vpop.permute.xlu1 %149 }
  0xce   :  { %v154_v20 = vpop.permute.xlu1 %153 }
  0xcf   :  { %v164_v21 = vsel %vm274_vm1, %v142_v18, %v154_v20 }
  0xd0   :  { %v194_v23 = vsel %vm311_vm7, %v164_v21, %v185_v12 }
  0xd1   :  { %197 = vst [vmem:[%s358_s2] sm:$0xff] %v194_v23 }
  0xd2   :  { %v162_v24 = vpop.permute.xlu1 %161 }
  0xd3   :  { %v166_v25 = vsel %vm274_vm1, %v150_v19, %v162_v24 }
  0xd4   :  { %v196_v26 = vsel %vm311_vm7, %v166_v25, %v187_v17 }
  0xd5   :  { %199 = vst [vmem:[%s358_s2 + $0x10] sm:$0xf] %v196_v26 }

</bundles_post_ra>
